<compile_context>
chip_gen: v7x
topology: tpu7x:2x2x1
jax: 0.10.0
libtpu: 0.0.40
codegen_flags: <defaults>
</compile_context>

<pallas_src>
import math

import jax
import jax.numpy as jnp
from jax import lax
from jax.experimental import pallas as pl
from jax.experimental.pallas import tpu as pltpu

_LANE = 128
_SUBLANE = 8
_DN = (((1,), (1,)), ((), ()))  # contract last dim of both operands (no transpose)


# ------------------------------ helpers -------------------------------------

def _round_up(x, m):
    return ((x + m - 1) // m) * m


def _divisor_tile(total, cap):
    """Largest multiple-of-128 divisor of `total` (itself a multiple of 128)
    that is <= cap; falls back to 128."""
    best = _LANE
    d = _LANE
    while d <= total:
        if total % d == 0 and d <= cap:
            best = d
        d += _LANE
    return best


# ------------------------------ kernels -------------------------------------

def _make_train_kernel(TK, multi_k, x_resident):
    """y = x @ Wmu.T + eps_out * ((x * eps_in) @ Wsig.T) + b_eff."""

    def kernel(x_ref, wmu_ref, wsig_ref, ein_ref, eout_ref, beff_ref,
               out_ref, *scratch):
        k = pl.program_id(1)
        if x_resident:
            start = pl.multiple_of(k * TK, TK)
            x = x_ref[:, pl.ds(start, TK)]
        else:
            x = x_ref[...]

        part = lax.dot_general(x, wmu_ref[...], _DN,
                               preferred_element_type=jnp.float32)
        part += eout_ref[...] * lax.dot_general(
            x * ein_ref[...], wsig_ref[...], _DN,
            preferred_element_type=jnp.float32)

        if multi_k:
            acc_ref, = scratch

            @pl.when(k == 0)
            def _():
                acc_ref[...] = jnp.zeros_like(acc_ref)

            acc_ref[...] += part

            @pl.when(k == pl.num_programs(1) - 1)
            def _():
                out_ref[...] = (acc_ref[...] + beff_ref[...]).astype(out_ref.dtype)
        else:
            out_ref[...] = (part + beff_ref[...]).astype(out_ref.dtype)

    return kernel


def _make_mu_kernel(TK, multi_k, x_resident):
    """Eval path: y = x @ Wmu.T + b_mu (streams only weight_mu)."""

    def kernel(x_ref, wmu_ref, bmu_ref, out_ref, *scratch):
        k = pl.program_id(1)
        if x_resident:
            start = pl.multiple_of(k * TK, TK)
            x = x_ref[:, pl.ds(start, TK)]
        else:
            x = x_ref[...]

        part = lax.dot_general(x, wmu_ref[...], _DN,
                               preferred_element_type=jnp.float32)

        if multi_k:
            acc_ref, = scratch

            @pl.when(k == 0)
            def _():
                acc_ref[...] = jnp.zeros_like(acc_ref)

            acc_ref[...] += part

            @pl.when(k == pl.num_programs(1) - 1)
            def _():
                out_ref[...] = (acc_ref[...] + bmu_ref[...]).astype(out_ref.dtype)
        else:
            out_ref[...] = (part + bmu_ref[...]).astype(out_ref.dtype)

    return kernel


# ------------------------------ wrapper -------------------------------------

def noisy_linear(x, params, *, training=True, tn=512, tk=4096, x_resident=None):
    """Pallas implementation of NoisyLinear.forward.

    x: (B, in_features) f32.  `params` holds weight_mu/weight_sigma already
    padded to (out_f_p, in_f_p) (done once at init), plus the 1-D bias / noise
    vectors and the logical feature sizes.
    """
    in_f = params["in_features"]
    out_f = params["out_features"]
    wmu = params["weight_mu_padded"]
    out_f_p, in_f_p = wmu.shape

    B = x.shape[0]
    B_p = _round_up(max(B, 1), _SUBLANE)

    # ---- tile selection ----
    tn_cap = min(tn, out_f_p)
    if out_f_p >= 2 * _LANE:
        # >= 2 steps on the "parallel" axis so both v7x TensorCores get work.
        tn_cap = min(tn_cap, out_f_p // 2)
    TN = _divisor_tile(out_f_p, tn_cap)
    # Keep TN*TK <= ~1M f32 elems so double-buffered Wmu+Wsig stay well under
    # the v7x (64 MiB) / v5e-scoped VMEM limits while maximizing DMA length.
    tk_cap = min(tk, in_f_p, max(_LANE, (1 << 20) // TN))
    TK = _divisor_tile(in_f_p, tk_cap)
    grid = (out_f_p // TN, in_f_p // TK)
    multi_k = grid[1] > 1

    x_bytes_resident = B_p * in_f_p * 4
    if x_resident is None:
        x_resident = x_bytes_resident <= (8 << 20)

    # ---- tiny per-call padding (activations / rows only; never the weights) --
    x_p = jnp.pad(x.astype(jnp.float32), ((0, B_p - B), (0, in_f_p - in_f)))

    def row(v, n):
        return jnp.pad(v.astype(jnp.float32), (0, n - v.shape[0])).reshape(1, n)

    if x_resident:
        x_spec = pl.BlockSpec((B_p, in_f_p), lambda n, k: (0, 0))  # load x once
        x_bytes = x_bytes_resident
    else:
        x_spec = pl.BlockSpec((B_p, TK), lambda n, k: (0, k))
        x_bytes = 2 * B_p * TK * 4

    n_w = 2 if training else 1
    vmem_need = (2 * n_w * TN * TK * 4            # weights, double-buffered
                 + x_bytes
                 + 2 * B_p * TN * 4               # output tiles
                 + (B_p * TN * 4 if multi_k else 0)
                 + 8 * (TN + TK) * 4)             # bias / noise rows
    compiler_params = pltpu.CompilerParams(
        dimension_semantics=("parallel", "arbitrary"),
        vmem_limit_bytes=int(min(max(32 << 20, 2 * vmem_need), 48 << 20)))

    out_spec = pl.BlockSpec((B_p, TN), lambda n, k: (0, n))
    scratch = [pltpu.VMEM((B_p, TN), jnp.float32)] if multi_k else []

    if training:
        wsig = params["weight_sigma_padded"]
        ein_p = row(params["epsilon_in"], in_f_p)                 # (1, in_f_p)
        eout_p = row(params["epsilon_out"], out_f_p)              # (1, out_f_p)
        beff = params["bias_mu"] + params["bias_sigma"] * params["bias_epsilon"]
        beff_p = row(beff, out_f_p)                               # (1, out_f_p)

        y_p = pl.pallas_call(
            _make_train_kernel(TK, multi_k, x_resident),
            out_shape=jax.ShapeDtypeStruct((B_p, out_f_p), jnp.float32),
            grid_spec=pltpu.PrefetchScalarGridSpec(
                num_scalar_prefetch=0,
                grid=grid,
                in_specs=[
                    x_spec,                                              # x
                    pl.BlockSpec((TN, TK), lambda n, k: (n, k)),         # W_mu
                    pl.BlockSpec((TN, TK), lambda n, k: (n, k)),         # W_sigma
                    pl.BlockSpec((1, TK), lambda n, k: (0, k)),          # eps_in
                    pl.BlockSpec((1, TN), lambda n, k: (0, n)),          # eps_out
                    pl.BlockSpec((1, TN), lambda n, k: (0, n)),          # b_eff
                ],
                out_specs=out_spec,
                scratch_shapes=scratch),
            compiler_params=compiler_params,
        )(x_p, wmu, wsig, ein_p, eout_p, beff_p)
    else:
        bmu_p = row(params["bias_mu"], out_f_p)
        y_p = pl.pallas_call(
            _make_mu_kernel(TK, multi_k, x_resident),
            out_shape=jax.ShapeDtypeStruct((B_p, out_f_p), jnp.float32),
            grid_spec=pltpu.PrefetchScalarGridSpec(
                num_scalar_prefetch=0,
                grid=grid,
                in_specs=[
                    x_spec,                                              # x
                    pl.BlockSpec((TN, TK), lambda n, k: (n, k)),         # W_mu
                    pl.BlockSpec((1, TN), lambda n, k: (0, n)),          # b_mu
                ],
                out_specs=out_spec,
                scratch_shapes=scratch),
            compiler_params=compiler_params,
        )(x_p, wmu, bmu_p)

    return y_p[:B, :out_f]


# ------------------------- parameter / noise init ---------------------------

def _scale_noise(key, size):
    # x = randn(size); x = sign(x) * sqrt(abs(x))
    x = jax.random.normal(key, (size,), dtype=jnp.float32)
    return jnp.sign(x) * jnp.sqrt(jnp.abs(x))


def init_noisy_linear(key, in_features, out_features, std_init=0.5):
    """Parameters are stored with the weights ALREADY padded to (8,128)-aligned
    shapes, so the forward pass never copies/pads the weight matrices."""
    k_wmu, k_bmu, k_ein, k_eout, k_beps = jax.random.split(key, 5)
    mu_range = 1.0 / math.sqrt(in_features)

    weight_mu = jax.random.uniform(
        k_wmu, (out_features, in_features), jnp.float32, -mu_range, mu_range)
    weight_sigma = jnp.full((out_features, in_features),
                            std_init / math.sqrt(in_features), jnp.float32)
    bias_mu = jax.random.uniform(
        k_bmu, (out_features,), jnp.float32, -mu_range, mu_range)
    bias_sigma = jnp.full((out_features,),
                          std_init / math.sqrt(out_features), jnp.float32)

    in_f_p = _round_up(in_features, _LANE)
    out_f_p = _round_up(out_features, _LANE)

    def pad2(a):
        return jnp.pad(a, ((0, out_f_p - out_features), (0, in_f_p - in_features)))

    # reset_noise(): factorized Gaussian noise kept in factorized form
    # (the (out,in) outer product is never materialized in HBM).
    return dict(
        in_features=in_features, out_features=out_features,
        weight_mu_padded=pad2(weight_mu),
        weight_sigma_padded=pad2(weight_sigma),
        bias_mu=bias_mu, bias_sigma=bias_sigma,
        epsilon_in=_scale_noise(k_ein, in_features),
        epsilon_out=_scale_noise(k_eout, out_features),
        bias_epsilon=_scale_noise(k_beps, out_features),
    )


# ------------------------------ demo / check --------------------------------

def _ref_forward(x, p, training):
    out_f, in_f = p["out_features"], p["in_features"]
    wmu = p["weight_mu_padded"][:out_f, :in_f]
    if training:
        wsig = p["weight_sigma_padded"][:out_f, :in_f]
        w_eff = wmu + wsig * jnp.outer(p["epsilon_out"], p["epsilon_in"])
        b_eff = p["bias_mu"] + p["bias_sigma"] * p["bias_epsilon"]
        return x @ w_eff.T + b_eff
    return x @ wmu.T + p["bias_mu"]


def _run_case(key, B, in_features, out_features, **kwargs):
    k_params, k_x = jax.random.split(key)
    params = init_noisy_linear(k_params, in_features, out_features)
    x = jax.random.normal(k_x, (B, in_features), dtype=jnp.float32)

    y_train = noisy_linear(x, params, training=True, **kwargs)
    jax.block_until_ready(y_train)
    y_eval = noisy_linear(x, params, training=False, **kwargs)
    jax.block_until_ready(y_eval)

    ref_train = _ref_forward(x, params, training=True)
    ref_eval = _ref_forward(x, params, training=False)

    assert y_train.shape == (B, out_features)
    assert y_eval.shape == (B, out_features)
    assert jnp.allclose(y_train, ref_train, atol=1e-4, rtol=1e-4)
    assert jnp.allclose(y_eval, ref_eval, atol=1e-4, rtol=1e-4)


if __name__ == "__main__":
    key = jax.random.PRNGKey(0)
    k1, k2, k3 = jax.random.split(key, 3)

    # Small shape matching the module's typical use: single grid step,
    # no accumulator scratch, x resident.
    _run_case(k1, B=8, in_features=32, out_features=64)

    # Larger shape with small tk to exercise the (parallel, arbitrary) grid,
    # multi-step k reduction with f32 accumulator, and >=2 parallel n steps.
    _run_case(k2, B=8, in_features=384, out_features=320, tk=128)

    # Non-resident x path (per-k x tiles) and non-multiple-of-8 batch.
    _run_case(k3, B=4, in_features=256, out_features=256, x_resident=False)

    print("KERNEL_OK")
</pallas_src>

<mosaic_0001>
module attributes {stable_mosaic.version = 11 : i64} {
  func.func @kernel(%arg0: i32, %arg1: i32, %arg2: memref<8x128xf32, #tpu.memory_space<vmem>>, %arg3: memref<128x128xf32, #tpu.memory_space<vmem>>, %arg4: memref<128x128xf32, #tpu.memory_space<vmem>>, %arg5: memref<1x128xf32, #tpu.memory_space<vmem>>, %arg6: memref<1x128xf32, #tpu.memory_space<vmem>>, %arg7: memref<1x128xf32, #tpu.memory_space<vmem>>, %arg8: memref<8x128xf32, #tpu.memory_space<vmem>>) attributes {dimension_semantics = [#tpu.dimension_semantics<parallel>, #tpu.dimension_semantics<arbitrary>], iteration_bounds = array<i64: 1, 1>, scalar_prefetch = 0 : i64, scratch_operands = 0 : i64, tpu.core_type = #tpu.core_type<tc>, window_params = [{pipeline_mode = #tpu.pipeline_mode<synchronous>, transform_indices = @transform_0, window_bounds = array<i64: 8, 128>}, {transform_indices = @transform_1, window_bounds = array<i64: 128, 128>}, {transform_indices = @transform_2, window_bounds = array<i64: 128, 128>}, {transform_indices = @transform_3, window_bounds = array<i64: 1, 128>}, {transform_indices = @transform_4, window_bounds = array<i64: 1, 128>}, {transform_indices = @transform_5, window_bounds = array<i64: 1, 128>}, {transform_indices = @transform_6, window_bounds = array<i64: 8, 128>}]} {
    %c128_i32 = arith.constant 128 : i32
    %0 = arith.muli %arg1, %c128_i32 : i32
    %1 = tpu.assume_multiple %0, 128 : i32
    %c0 = arith.constant 0 : index
    %2 = arith.index_cast %1 : i32 to index
    %3 = vector.load %arg2[%c0, %2] : memref<8x128xf32, #tpu.memory_space<vmem>>, vector<8x128xf32>
    %c0_0 = arith.constant 0 : index
    %c0_1 = arith.constant 0 : index
    %4 = vector.load %arg3[%c0_0, %c0_1] : memref<128x128xf32, #tpu.memory_space<vmem>>, vector<128x128xf32>
    %cst = arith.constant dense<0.000000e+00> : vector<8x128xf32>
    %5 = tpu.matmul %3, %4, %cst {dimension_numbers = #tpu.dot_dimension_numbers<[1], [1], [0], [0], [0, 0, 1, 0], [], []>} : vector<8x128xf32>, vector<128x128xf32>, vector<8x128xf32> -> vector<8x128xf32>
    %c0_2 = arith.constant 0 : index
    %c0_3 = arith.constant 0 : index
    %6 = vector.load %arg6[%c0_2, %c0_3] : memref<1x128xf32, #tpu.memory_space<vmem>>, vector<1x128xf32>
    %c0_4 = arith.constant 0 : index
    %c0_5 = arith.constant 0 : index
    %7 = vector.load %arg5[%c0_4, %c0_5] : memref<1x128xf32, #tpu.memory_space<vmem>>, vector<1x128xf32>
    %8 = vector.broadcast %7 : vector<1x128xf32> to vector<8x128xf32>
    %9 = arith.mulf %3, %8 : vector<8x128xf32>
    %c0_6 = arith.constant 0 : index
    %c0_7 = arith.constant 0 : index
    %10 = vector.load %arg4[%c0_6, %c0_7] : memref<128x128xf32, #tpu.memory_space<vmem>>, vector<128x128xf32>
    %cst_8 = arith.constant dense<0.000000e+00> : vector<8x128xf32>
    %11 = tpu.matmul %9, %10, %cst_8 {dimension_numbers = #tpu.dot_dimension_numbers<[1], [1], [0], [0], [0, 0, 1, 0], [], []>} : vector<8x128xf32>, vector<128x128xf32>, vector<8x128xf32> -> vector<8x128xf32>
    %12 = vector.broadcast %6 : vector<1x128xf32> to vector<8x128xf32>
    %13 = arith.mulf %12, %11 : vector<8x128xf32>
    %14 = arith.addf %5, %13 : vector<8x128xf32>
    %c0_9 = arith.constant 0 : index
    %c0_10 = arith.constant 0 : index
    %15 = vector.load %arg7[%c0_9, %c0_10] : memref<1x128xf32, #tpu.memory_space<vmem>>, vector<1x128xf32>
    %16 = vector.broadcast %15 : vector<1x128xf32> to vector<8x128xf32>
    %17 = arith.addf %14, %16 : vector<8x128xf32>
    %c0_11 = arith.constant 0 : index
    %c0_12 = arith.constant 0 : index
    %18 = vector.load %arg8[%c0_11, %c0_12] : memref<8x128xf32, #tpu.memory_space<vmem>>, vector<8x128xf32>
    tpu.vector_store %arg8[%c0_11, %c0_12], %17 {strides = array<i32>} : memref<8x128xf32, #tpu.memory_space<vmem>>, vector<8x128xf32>,
    return
  }
  func.func @transform_0(%arg0: i32, %arg1: i32) -> (i32, i32) {
    %c0_i32 = arith.constant 0 : i32
    %c0_i32_0 = arith.constant 0 : i32
    %c0_i32_1 = arith.constant 0 : i32
    return %c0_i32, %c0_i32_0 : i32, i32
  }
  func.func @transform_1(%arg0: i32, %arg1: i32) -> (i32, i32) {
    %c0_i32 = arith.constant 0 : i32
    return %arg0, %arg1 : i32, i32
  }
  func.func @transform_2(%arg0: i32, %arg1: i32) -> (i32, i32) {
    %c0_i32 = arith.constant 0 : i32
    return %arg0, %arg1 : i32, i32
  }
  func.func @transform_3(%arg0: i32, %arg1: i32) -> (i32, i32) {
    %c0_i32 = arith.constant 0 : i32
    %c0_i32_0 = arith.constant 0 : i32
    return %c0_i32, %arg1 : i32, i32
  }
  func.func @transform_4(%arg0: i32, %arg1: i32) -> (i32, i32) {
    %c0_i32 = arith.constant 0 : i32
    %c0_i32_0 = arith.constant 0 : i32
    return %c0_i32, %arg0 : i32, i32
  }
  func.func @transform_5(%arg0: i32, %arg1: i32) -> (i32, i32) {
    %c0_i32 = arith.constant 0 : i32
    %c0_i32_0 = arith.constant 0 : i32
    return %c0_i32, %arg0 : i32, i32
  }
  func.func @transform_6(%arg0: i32, %arg1: i32) -> (i32, i32) {
    %c0_i32 = arith.constant 0 : i32
    %c0_i32_0 = arith.constant 0 : i32
    return %c0_i32, %arg0 : i32, i32
  }
}

</mosaic_0001>

<bundles_post_ra>
// kernel: tpu_custom_call.1
= control target key start
LH: loop header
LB: loop body
LE: loop exit
PB: predicated region body
PF: predicated region fallthrough
CT: control target
= control target key end

     0   :  { %11 = vsyncpa [#allocation3], 0  ;;  %s663_s0 = inlined_call_operand.hbm [shape: f32[8,128], index: 0, kind: input, shape index: {}]   ;;  %s664_s1 = inlined_call_operand.hbm [shape: f32[128,128], index: 1, kind: input, shape index: {}]   ;;  %s665_s2 = inlined_call_operand.hbm [shape: f32[128,128], index: 2, kind: input, shape index: {}]   ;;  %s666_s3 = inlined_call_operand.vmem [shape: f32[1,128], index: 3, kind: input, shape index: {}]   ;;  %s667_s4 = inlined_call_operand.vmem [shape: f32[1,128], index: 4, kind: input, shape index: {}]   ;;  %s668_s5 = inlined_call_operand.vmem [shape: f32[1,128], index: 5, kind: input, shape index: {}]   ;;  %s669_s6 = inlined_call_operand.hbm [shape: f32[8,128], index: 6, kind: output, shape index: {}]  }
   0x1   :  { %12 = vsyncpa [#allocation6], 0 }
   0x2   :  { %13 = vsyncpa [#allocation4], 0  ;;  %s540_s21 = smov [#allocation5]   ;;  %s446_s25 = scalar_lea.hbm %s664_s1, 2048 }
   0x3   :  { %s29_s22 = sshll.u32 %s540_s21, 4  ;;  %p447_p0 = scmp.ne.s32.totalorder %s664_s1, %s446_s25  ;;  %s30_s22 = int_to_ptr.vmem [resolvable:$true] %s29_s22 }
   0x4   :  { %p450_p1 = scmp.lt.u32.totalorder %s446_s25, %s664_s1 }
   0x6   :  { %p452_p2 = pnand %p450_p1, %p447_p0 }
   0x8   :  { %455 = shalt.err (!%p452_p2)
}
   0x9   :  { %s456_s30 = scalar_lea.vmem %s30_s22, 2048  ;;  %p461_p4 = scmp.lt.s32.totalorder %s30_s22, %s30_s22 }
   0xa   :  { %p457_p3 = scmp.ne.s32.totalorder %s30_s22, %s456_s30  ;;  %p462_p5 = scmp.lt.s32.totalorder %s456_s30, %s456_s30 }
   0xc   :  { %p463_p6 = por %p462_p5, %p461_p4 }
   0xe   :  { %p464_p7 = pnand %p463_p6, %p457_p3 }
  0x10   :  { %467 = shalt.err (!%p464_p7)
}
  0x11   :  { %s541_s7 = smov 128   ;;  %s542_s8 = smov 8  }
  0x12   :  { %35 = dma.hbm_to_vmem [thread:$0]  %s664_s1, 2048, %s30_s22, [#allocation6], %s541_s7, %s541_s7, %s542_s8  }
  0x13   :  { %s543_s11 = smov [#allocation2]   ;;  %s544_s13 = smov [#allocation7]  }
  0x14   :  { %s20_s12 = sshll.u32 %s543_s11, 4  ;;  %s41_s14 = sshll.u32 %s544_s13, 4  ;;  %s21_s12 = int_to_ptr.vmem [resolvable:$true] %s20_s12  ;;  %s42_s14 = int_to_ptr.vmem [resolvable:$true] %s41_s14 }
  0x15   :  { %s468_s17 = scalar_lea.hbm %s663_s0, 128 }
  0x16   :  { %p469_p8 = scmp.ne.s32.totalorder %s663_s0, %s468_s17  ;;  %p472_p9 = scmp.lt.u32.totalorder %s468_s17, %s663_s0 }
  0x18   :  { %p474_p10 = pnand %p472_p9, %p469_p8 }
  0x1a   :  { %477 = shalt.err (!%p474_p10)
}
  0x1b   :  { %s478_s1 = scalar_lea.vmem %s21_s12, 128  ;;  %p483_p12 = scmp.lt.s32.totalorder %s21_s12, %s21_s12 }
  0x1c   :  { %p479_p11 = scmp.ne.s32.totalorder %s21_s12, %s478_s1  ;;  %p484_p13 = scmp.lt.s32.totalorder %s478_s1, %s478_s1 }
  0x1e   :  { %p485_p0 = por %p484_p13, %p483_p12 }
  0x20   :  { %p486_p1 = pnand %p485_p0, %p479_p11 }
  0x22   :  { %489 = shalt.err (!%p486_p1)
}
  0x23   :  { %23 = dma.hbm_to_vmem [thread:$0]  %s663_s0, 128, %s21_s12, [#allocation3]  }
  0x24   :  { %s490_s26 = scalar_lea.hbm %s665_s2, 2048 }
  0x25   :  { %p491_p2 = scmp.ne.s32.totalorder %s665_s2, %s490_s26  ;;  %p494_p3 = scmp.lt.u32.totalorder %s490_s26, %s665_s2 }
  0x27   :  { %p496_p4 = pnand %p494_p3, %p491_p2 }
  0x29   :  { %499 = shalt.err (!%p496_p4)
}
  0x2a   :  { %s500_s9 = scalar_lea.vmem %s42_s14, 2048  ;;  %p505_p6 = scmp.lt.s32.totalorder %s42_s14, %s42_s14 }
  0x2b   :  { %p501_p5 = scmp.ne.s32.totalorder %s42_s14, %s500_s9  ;;  %p506_p7 = scmp.lt.s32.totalorder %s500_s9, %s500_s9 }
  0x2d   :  { %p507_p8 = por %p506_p7, %p505_p6 }
  0x2f   :  { %p508_p9 = pnand %p507_p8, %p501_p5 }
  0x31   :  { %511 = shalt.err (!%p508_p9)
}
  0x32   :  { %47 = dma.hbm_to_vmem [thread:$0]  %s665_s2, 2048, %s42_s14, [#allocation6], %s541_s7, %s541_s7, %s542_s8  }
  0x33   :  { %534 = dma.done.wait [#allocation3], 128  }
  0x34   :  { %535 = vsyncadd [#allocation3], 4294967168 }
  0x35   :  { %536 = dma.done.wait [#allocation6], 4096  }
  0x36   :  { %537 = vsyncadd [#allocation6], 4294963200  ;;  %v545_v0 = vmov 0.0|0.0   ;;  %vm546_vm0 = vmmov 0   ;;  %v547_v1 = vmov 0.0   ;;  %v93_v2 = vld [vmem:[#allocation7] sm:$0xff] }
  0x37   :  { %389 = vmatprep.subr.bf16.mxu0 %v545_v0  ;;  %413 = vmatprep.subr.bf16.mxu1 %v545_v0  ;;  %v94_v3 = vld [vmem:[#allocation7 + $0x8] sm:$0xff]  ;;  %v68_v4 = vld [vmem:[#allocation5] sm:$0xff]  ;;  %v95_v8 = vld [vmem:[#allocation7 + $0x10] sm:$0xff]  ;;  %s548_s14 = smov [#allocation8]  }
  0x38   :  { %351 = vmatprep.mubr.msk.f32.mxu0 %vm546_vm0, %v547_v1  ;;  %386 = vmatprep.mubr.msk.f32.mxu1 %vm546_vm0, %v547_v1  ;;  %v390_v5 = vpack.c.bf16 %v94_v3, %v93_v2  ;;  %v69_v6 = vld [vmem:[#allocation5 + $0x8] sm:$0xff]  ;;  %v96_v9 = vld [vmem:[#allocation7 + $0x18] sm:$0xff]  ;;  %v70_v10 = vld [vmem:[#allocation5 + $0x10] sm:$0xff]  ;;  %s271_s15 = sshll.u32 %s548_s14, 4  ;;  %s272_s15 = int_to_ptr.vmem [resolvable:$true] %s271_s15 }
  0x39   :  { %v414_v7 = vpack.c.bf16 %v69_v6, %v68_v4  ;;  %v71_v11 = vld [vmem:[#allocation5 + $0x18] sm:$0xff]  ;;  %v393_v12 = vpack.c.bf16 %v96_v9, %v95_v8  ;;  %v97_v14 = vld [vmem:[#allocation7 + $0x20] sm:$0xff]  ;;  %v98_v15 = vld [vmem:[#allocation7 + $0x28] sm:$0xff]  ;;  %p517_p11 = scmp.lt.s32.totalorder %s272_s15, %s272_s15 }
  0x3a   :  { %391 = vmatpush3.bf16.xpose.msra.mxu0 %v390_v5  ;;  %v417_v13 = vpack.c.bf16 %v71_v11, %v70_v10  ;;  %v72_v16 = vld [vmem:[#allocation5 + $0x20] sm:$0xff]  ;;  %v73_v17 = vld [vmem:[#allocation5 + $0x28] sm:$0xff]  ;;  %v396_v18 = vpack.c.bf16 %v98_v15, %v97_v14  ;;  %v99_v20 = vld [vmem:[#allocation7 + $0x30] sm:$0xff] }
  0x3b   :  { %415 = vmatpush3.bf16.xpose.msra.mxu1 %v414_v7  ;;  %392 = vmatprep.subr.bf16.mxu0 %v545_v0  ;;  %v420_v19 = vpack.c.bf16 %v73_v17, %v72_v16  ;;  %v100_v21 = vld [vmem:[#allocation7 + $0x38] sm:$0xff]  ;;  %v74_v22 = vld [vmem:[#allocation5 + $0x30] sm:$0xff]  ;;  %v101_v26 = vld [vmem:[#allocation7 + $0x40] sm:$0xff] }
  0x3c   :  { %416 = vmatprep.subr.bf16.mxu1 %v545_v0  ;;  %v75_v23 = vld [vmem:[#allocation5 + $0x38] sm:$0xff]  ;;  %v399_v24 = vpack.c.bf16 %v100_v21, %v99_v20  ;;  %v102_v27 = vld [vmem:[#allocation7 + $0x48] sm:$0xff]  ;;  %v76_v28 = vld [vmem:[#allocation5 + $0x40] sm:$0xff] }
  0x3d   :  { %v423_v25 = vpack.c.bf16 %v75_v23, %v74_v22  ;;  %v77_v29 = vld [vmem:[#allocation5 + $0x48] sm:$0xff]  ;;  %v402_v30 = vpack.c.bf16 %v102_v27, %v101_v26  ;;  %v103_v32 = vld [vmem:[#allocation7 + $0x50] sm:$0xff]  ;;  %v104_v33 = vld [vmem:[#allocation7 + $0x58] sm:$0xff] }
  0x3e   :  { %v426_v31 = vpack.c.bf16 %v77_v29, %v76_v28  ;;  %v78_v34 = vld [vmem:[#allocation5 + $0x50] sm:$0xff]  ;;  %v79_v35 = vld [vmem:[#allocation5 + $0x58] sm:$0xff]  ;;  %v405_v36 = vpack.c.bf16 %v104_v33, %v103_v32  ;;  %v105_v38 = vld [vmem:[#allocation7 + $0x60] sm:$0xff] }
  0x3f   :  { %v429_v37 = vpack.c.bf16 %v79_v35, %v78_v34  ;;  %v106_v39 = vld [vmem:[#allocation7 + $0x68] sm:$0xff]  ;;  %v80_v40 = vld [vmem:[#allocation5 + $0x60] sm:$0xff]  ;;  %v107_v44 = vld [vmem:[#allocation7 + $0x70] sm:$0xff] }
  0x40   :  { %v81_v41 = vld [vmem:[#allocation5 + $0x68] sm:$0xff]  ;;  %v408_v42 = vpack.c.bf16 %v106_v39, %v105_v38  ;;  %v108_v45 = vld [vmem:[#allocation7 + $0x78] sm:$0xff]  ;;  %v82_v46 = vld [vmem:[#allocation5 + $0x70] sm:$0xff] }
  0x41   :  { %v432_v43 = vpack.c.bf16 %v81_v41, %v80_v40  ;;  %v83_v47 = vld [vmem:[#allocation5 + $0x78] sm:$0xff]  ;;  %v411_v48 = vpack.c.bf16 %v108_v45, %v107_v44 }
  0x42   :  { %394 = vmatpush3.bf16.xpose.msra.mxu0 %v393_v12  ;;  %v435_v49 = vpack.c.bf16 %v83_v47, %v82_v46  ;;  %v67_v50 = vld [vmem:[#allocation2] sm:$0xff] }
  0x43   :  { %418 = vmatpush3.bf16.xpose.msra.mxu1 %v417_v13  ;;  %395 = vmatprep.subr.bf16.mxu0 %v545_v0  ;;  %v282_v51 = vld [vmem:[%s666_s3] ss:$0 sm:$0xff]  ;;  %s512_s3 = scalar_lea.vmem %s272_s15, 128 }
  0x44   :  { %419 = vmatprep.subr.bf16.mxu1 %v545_v0  ;;  %v92_v52 = vmul.f32 %v282_v51, %v67_v50  ;;  %v283_v53 = vld [vmem:[%s667_s4] ss:$0 sm:$0xff]  ;;  %p513_p10 = scmp.ne.s32.totalorder %s272_s15, %s512_s3  ;;  %p518_p12 = scmp.lt.s32.totalorder %s512_s3, %s512_s3 }
  0x45   :  { %v284_v58 = vld [vmem:[%s668_s5] ss:$0 sm:$0xff] }
  0x46   :  { %p519_p13 = por %p518_p12, %p517_p11 }
  0x48   :  { %p520_p0 = pnand %p519_p13, %p513_p10 }
  0x4a   :  { %397 = vmatpush3.bf16.xpose.msra.mxu0 %v396_v18 }
  0x4b   :  { %421 = vmatpush3.bf16.xpose.msra.mxu1 %v420_v19  ;;  %398 = vmatprep.subr.bf16.mxu0 %v545_v0 }
  0x4c   :  { %422 = vmatprep.subr.bf16.mxu1 %v545_v0 }
  0x52   :  { %400 = vmatpush3.bf16.xpose.msra.mxu0 %v399_v24 }
  0x53   :  { %424 = vmatpush3.bf16.xpose.msra.mxu1 %v423_v25  ;;  %401 = vmatprep.subr.bf16.mxu0 %v545_v0 }
  0x54   :  { %425 = vmatprep.subr.bf16.mxu1 %v545_v0 }
  0x5a   :  { %403 = vmatpush3.bf16.xpose.msra.mxu0 %v402_v30 }
  0x5b   :  { %427 = vmatpush3.bf16.xpose.msra.mxu1 %v426_v31  ;;  %404 = vmatprep.subr.bf16.mxu0 %v545_v0 }
  0x5c   :  { %428 = vmatprep.subr.bf16.mxu1 %v545_v0 }
  0x62   :  { %406 = vmatpush3.bf16.xpose.msra.mxu0 %v405_v36 }
  0x63   :  { %430 = vmatpush3.bf16.xpose.msra.mxu1 %v429_v37  ;;  %407 = vmatprep.subr.bf16.mxu0 %v545_v0 }
  0x64   :  { %431 = vmatprep.subr.bf16.mxu1 %v545_v0 }
  0x6a   :  { %409 = vmatpush3.bf16.xpose.msra.mxu0 %v408_v42 }
  0x6b   :  { %433 = vmatpush3.bf16.xpose.msra.mxu1 %v432_v43  ;;  %410 = vmatprep.subr.bf16.mxu0 %v545_v0 }
  0x6c   :  { %434 = vmatprep.subr.bf16.mxu1 %v545_v0 }
  0x72   :  { %412 = vmatpush3.bf16.xpose.msra.mxu0 %v411_v48 }
  0x73   :  { %436 = vmatpush3.bf16.xpose.msra.mxu1 %v435_v49 }
  0x79   :  { %352 = vmatmul.mubr.f32.vlgmr.msra.gmra.mrb[0].mxu0 %v92_v52 }
  0x7a   :  { %387 = vmatmul.mubr.f32.vlgmr.msra.gmra.mrb[0].mxu1 %v67_v50 }
 0x14c   :  { %v175_v54 = vpop.f32.mrb[0].mxu0 }
 0x14d   :  { %v185_v55 = vmul.f32 %v283_v53, %v175_v54  ;;  %v353_v56 = vpop.f32.mrb[1].mxu0  ;;  %v252_v57 = vpop.f32.mrb[0].mxu1 }
 0x14e   :  { %v388_v59 = vpop.f32.mrb[1].mxu1 }
 0x14f   :  { %v253_v60 = vadd.f32 %v252_v57, %v185_v55 }
 0x151   :  { %v263_v61 = vadd.f32 %v284_v58, %v253_v60 }
 0x153   :  { %264 = vst [vmem:[#allocation8] sm:$0xff] %v263_v61 }
 0x154   :  { %523 = shalt.err (!%p520_p0)
}
 0x155   :  { %s524_s17 = scalar_lea.hbm %s669_s6, 128 }
 0x156   :  { %p525_p1 = scmp.ne.s32.totalorder %s669_s6, %s524_s17  ;;  %p528_p2 = scmp.lt.u32.totalorder %s524_s17, %s669_s6 }
 0x158   :  { %p530_p3 = pnand %p528_p2, %p525_p1 }
 0x15a   :  { %533 = shalt.err (!%p530_p3)
}
 0x15b   :  { %274 = dma.vmem_to_hbm [thread:$0]  %s272_s15, 128, %s669_s6, [#allocation4]  }
 0x15c   :  { %538 = dma.done.wait [#allocation4], 128  }
 0x15d   :  { %539 = vsyncadd [#allocation4], 4294967168 }
 0x15e   :  { %278 = vsyncpa [#allocation3], 1 }
 0x15f   :  { %279 = vsyncpa [#allocation6], 1 }
 0x160   :  { %280 = vsyncpa [#allocation4], 1 }

</bundles_post_ra>
